<compile_context>
chip_gen: v6e
topology: v6e:2x2x1
jax: 0.10.0
libtpu: 0.0.40
codegen_flags: <defaults>
</compile_context>

<pallas_src>
import math
import numpy as np
import jax
import jax.numpy as jnp
from jax.experimental import pallas as pl
from jax.experimental.pallas import tpu as pltpu


# ----------------------------------------------------------------------------
# Helpers: block-size selection tuned to the MXU tile of the local chip.
# ----------------------------------------------------------------------------
def _mxu_row_target():
    """Target row count for BS: 128 on v5e (128-wide MXU), 256 on v6e/v7x."""
    try:
        kind = jax.devices()[0].device_kind.lower()
    except Exception:
        kind = ""
    return 128 if "v5" in kind else 256


def _pick_block_b(B, S, target_rows):
    """Largest divisor of B with block_b*S <= target_rows, preferring >= 2
    grid steps so the 'parallel' axis shards across v7x's two TensorCores."""
    divs = [d for d in range(1, B + 1) if B % d == 0 and d * S <= target_rows]
    if not divs:
        return 1
    multi = [d for d in divs if B // d >= 2]
    return max(multi) if multi else max(divs)


# ----------------------------------------------------------------------------
# Wrapper: one fused pallas_call, grid over batch blocks.
# ----------------------------------------------------------------------------
def lgcn_forward(batched_data, params, a_hat):
    B, S, D_in = batched_data.shape
    H = params["W_emb"].shape[1]
    n_layers = params["W_gcn"].shape[0]
    # TODO(synk): S == 1 has no neighbour rows; softmax over an empty set is
    # undefined in the reference too, so we require S >= 2.
    assert S >= 2, "LGCN needs at least one neighbour row (seq_len >= 2)"

    block_b = _pick_block_b(B, S, _mxu_row_target())
    if (block_b * S) % 8 != 0:
        block_b = B            # full-extent block is always layout-legal
    n_blocks = B // block_b
    BS = block_b * S

    # ---- fold all dense transforms (exact: pure affine chain) ---------------
    W_eff = params["W_gcn"][0]
    b_eff = params["b_gcn"][0]
    for l in range(1, n_layers):
        W_eff = W_eff @ params["W_gcn"][l]
        b_eff = b_eff @ params["W_gcn"][l] + params["b_gcn"][l]
    W_ge = params["W_gcn"][-1] @ W_eff                 # (H, H)
    b_ge = params["b_gcn"][-1] @ W_eff + b_eff         # (1, H)
    W_all = params["W_emb"] @ W_ge                     # (D_in, H)
    b_emb_ge = params["b_emb"] @ W_ge                  # (1, H)

    # A_blk @ (1 * b_emb_ge) == rowsum(A)[:,None] * b_emb_ge  (rank-1 correction)
    rowsum = jnp.sum(a_hat, axis=1, keepdims=True)     # (S, 1)
    bias_S = rowsum * b_emb_ge + b_ge                  # (S, H)
    bias_blk = jnp.tile(bias_S, (block_b, 1))          # (BS, H) f32

    # Block-diagonal adjacency kron(I_Bt, A_hat): bounded by block_b, f32.
    a_blk = jnp.kron(jnp.eye(block_b, dtype=a_hat.dtype), a_hat)   # (BS, BS)

    # Attention weight split into target / neighbour row vectors (VPU path).
    wa_t = params["W_attn"][:H, :].reshape(1, H)
    wa_n = params["W_attn"][H:, :].reshape(1, H)
    b_attn = jnp.reshape(params["b_attn"], (1,)).astype(jnp.float32)

    # Only per-step streamed input: pre-cast to bf16 (halves DMA bytes).
    x2d = batched_data.reshape(B * S, D_in).astype(jnp.bfloat16)

    def kernel(x_ref, a_ref, w_ref, bias_ref, ln_g_ref, ln_b_ref,
               wa_t_ref, wa_n_ref, b_attn_ref, out_ref):
        # ---- single dense matmul: (BS, D_in) @ (D_in, H), bf16 in, f32 acc
        xw = jnp.dot(x_ref[...], w_ref[...], preferred_element_type=jnp.float32)

        # ---- block-diagonal adjacency aggregation (f32) + fused affine bias
        t = jnp.dot(a_ref[...], xw,
                    preferred_element_type=jnp.float32) + bias_ref[...]

        # ---- final LayerNorm (f32, torch default eps = 1e-5)
        mean = jnp.mean(t, axis=-1, keepdims=True)
        var = jnp.mean((t - mean) ** 2, axis=-1, keepdims=True)
        out = (t - mean) * jax.lax.rsqrt(var + 1e-5) * ln_g_ref[...] + ln_b_ref[...]

        # ---- attention scores for all rows at once: VPU multiply + lane reduce
        n_score = jnp.sum(out * wa_n_ref[...], axis=-1, keepdims=True)  # (BS,1)
        t_score = jnp.sum(out * wa_t_ref[...], axis=-1, keepdims=True)  # (BS,1)

        # ---- vectorized per-graph softmax over the S-1 neighbour rows
        ns = n_score.reshape(block_b, S, 1)
        ts = t_score.reshape(block_b, S, 1)
        score = ns + ts[:, 0:1, :] + b_attn_ref[0]                      # (Bt,S,1)

        row = jax.lax.broadcasted_iota(jnp.int32, (1, S, 1), 1)
        is_node = row == 0
        masked = jnp.where(is_node, -jnp.inf, score)
        m = jnp.max(masked, axis=1, keepdims=True)                      # (Bt,1,1)
        e = jnp.exp(masked - m)                     # exp(-inf) == 0 at node row
        atten = e / jnp.sum(e, axis=1, keepdims=True)                   # (Bt,S,1)

        # node row passes through (gate == 1), neighbour rows scaled by attention
        gate = jnp.where(is_node, 1.0, atten).reshape(BS, 1)
        out_ref[...] = (out * gate).astype(out_ref.dtype)

    res = pl.pallas_call(
        kernel,
        out_shape=jax.ShapeDtypeStruct((B * S, H), jnp.float32),
        grid=(n_blocks,),
        in_specs=[
            pl.BlockSpec((BS, D_in), lambda i: (i, 0)),          # x (bf16, streamed)
            pl.BlockSpec((BS, BS), lambda i: (0, 0)),            # block-diag A_hat (f32)
            pl.BlockSpec((D_in, H), lambda i: (0, 0)),           # W_all (bf16)
            pl.BlockSpec((BS, H), lambda i: (0, 0)),             # fused bias (f32)
            pl.BlockSpec((1, H), lambda i: (0, 0)),              # ln gamma
            pl.BlockSpec((1, H), lambda i: (0, 0)),              # ln beta
            pl.BlockSpec((1, H), lambda i: (0, 0)),              # wa_t
            pl.BlockSpec((1, H), lambda i: (0, 0)),              # wa_n
            pl.BlockSpec(memory_space=pltpu.MemorySpace.SMEM),   # b_attn scalar
        ],
        out_specs=pl.BlockSpec((BS, H), lambda i: (i, 0)),
        compiler_params=pltpu.CompilerParams(
            dimension_semantics=("parallel",),
            vmem_limit_bytes=32 * 1024 * 1024,
        ),
    )(
        x2d,
        a_blk,
        W_all.astype(jnp.bfloat16),
        bias_blk,
        params["ln_g"],
        params["ln_b"],
        wa_t,
        wa_n,
        b_attn,
    )

    res3 = res.reshape(B, S, H)
    node_tensor = res3[:, :1, :]        # (B, 1, H)
    neighbor_tensor = res3[:, 1:, :]    # (B, S-1, H)
    return node_tensor, neighbor_tensor


def build_chain_adjacency(S):
    # TODO(synk): `edge_index` is an undefined global in the reference module;
    # a deterministic per-graph chain (+ self-loops, symmetric norm) is used.
    A = np.zeros((S, S), dtype=np.float32)
    for s in range(S - 1):
        A[s, s + 1] = 1.0
        A[s + 1, s] = 1.0
    A = A + np.eye(S, dtype=np.float32)
    d_inv_sqrt = 1.0 / np.sqrt(A.sum(axis=1))
    return jnp.asarray((A * d_inv_sqrt[:, None]) * d_inv_sqrt[None, :],
                       jnp.float32)


if __name__ == "__main__":
    # Small shapes consistent with the module
    hops = 7                 # -> seq_len = 8
    seq_len = hops + 1
    B = 2
    input_dim = 16
    hidden_dim = 64
    n_layers = 6

    key = jax.random.PRNGKey(0)
    k_emb, k_gcn, k_attn, k_data = jax.random.split(key, 4)

    std_lin = 0.02 / math.sqrt(n_layers)         # init_params for nn.Linear
    params = {
        # stored transposed (in, out) so kernels compute x @ W
        "W_emb": (jax.random.normal(k_emb, (input_dim, hidden_dim), jnp.float32)
                  * std_lin),
        "b_emb": jnp.zeros((1, hidden_dim), jnp.float32),
        "W_gcn": (jax.random.normal(k_gcn, (n_layers, hidden_dim, hidden_dim),
                                    jnp.float32) * 0.02),
        "b_gcn": jnp.zeros((n_layers, 1, hidden_dim), jnp.float32),
        "ln_g": jnp.ones((1, hidden_dim), jnp.float32),
        "ln_b": jnp.zeros((1, hidden_dim), jnp.float32),
        "W_attn": (jax.random.normal(k_attn, (2 * hidden_dim, 1), jnp.float32)
                   * std_lin),
        "b_attn": jnp.zeros((1,), jnp.float32),
    }
    # TODO(synk): out_proj, scaling and dropout rates are defined in __init__
    # but never used in forward(); they are intentionally omitted.

    batched_data = jax.random.normal(k_data, (B, seq_len, input_dim), jnp.float32)
    a_hat = build_chain_adjacency(seq_len)

    fwd = jax.jit(lgcn_forward)
    node_tensor, neighbor_tensor = fwd(batched_data, params, a_hat)
    jax.block_until_ready((node_tensor, neighbor_tensor))

    assert node_tensor.shape == (B, 1, hidden_dim)
    assert neighbor_tensor.shape == (B, seq_len - 1, hidden_dim)
    assert bool(jnp.all(jnp.isfinite(node_tensor)))
    assert bool(jnp.all(jnp.isfinite(neighbor_tensor)))
    print("KERNEL_OK")
</pallas_src>

<mosaic_0001>
module attributes {stable_mosaic.version = 11 : i64} {
  func.func @kernel(%arg0: i32, %arg1: memref<8x16xbf16, #tpu.memory_space<vmem>>, %arg2: memref<8x8xf32, #tpu.memory_space<vmem>>, %arg3: memref<16x64xbf16, #tpu.memory_space<vmem>>, %arg4: memref<8x64xf32, #tpu.memory_space<vmem>>, %arg5: memref<1x64xf32, #tpu.memory_space<vmem>>, %arg6: memref<1x64xf32, #tpu.memory_space<vmem>>, %arg7: memref<1x64xf32, #tpu.memory_space<vmem>>, %arg8: memref<1x64xf32, #tpu.memory_space<vmem>>, %arg9: memref<1xf32, #tpu.memory_space<smem>>, %arg10: memref<8x64xf32, #tpu.memory_space<vmem>>) attributes {dimension_semantics = [#tpu.dimension_semantics<parallel>], iteration_bounds = array<i64: 2>, scalar_prefetch = 0 : i64, scratch_operands = 0 : i64, tpu.core_type = #tpu.core_type<tc>, window_params = [{transform_indices = @transform_0, window_bounds = array<i64: 8, 16>}, {pipeline_mode = #tpu.pipeline_mode<synchronous>, transform_indices = @transform_1, window_bounds = array<i64: 8, 8>}, {pipeline_mode = #tpu.pipeline_mode<synchronous>, transform_indices = @transform_2, window_bounds = array<i64: 16, 64>}, {pipeline_mode = #tpu.pipeline_mode<synchronous>, transform_indices = @transform_3, window_bounds = array<i64: 8, 64>}, {pipeline_mode = #tpu.pipeline_mode<synchronous>, transform_indices = @transform_4, window_bounds = array<i64: 1, 64>}, {pipeline_mode = #tpu.pipeline_mode<synchronous>, transform_indices = @transform_5, window_bounds = array<i64: 1, 64>}, {pipeline_mode = #tpu.pipeline_mode<synchronous>, transform_indices = @transform_6, window_bounds = array<i64: 1, 64>}, {pipeline_mode = #tpu.pipeline_mode<synchronous>, transform_indices = @transform_7, window_bounds = array<i64: 1, 64>}, {transform_indices = @transform_8, window_bounds = array<i64: 1>}, {transform_indices = @transform_9, window_bounds = array<i64: 8, 64>}]} {
    %c0 = arith.constant 0 : index
    %c0_0 = arith.constant 0 : index
    %0 = vector.load %arg1[%c0, %c0_0] : memref<8x16xbf16, #tpu.memory_space<vmem>>, vector<8x16xbf16>
    %c0_1 = arith.constant 0 : index
    %c0_2 = arith.constant 0 : index
    %1 = vector.load %arg3[%c0_1, %c0_2] : memref<16x64xbf16, #tpu.memory_space<vmem>>, vector<16x64xbf16>
    %cst = arith.constant dense<0.000000e+00> : vector<8x64xf32>
    %2 = tpu.matmul %0, %1, %cst {dimension_numbers = #tpu.dot_dimension_numbers<[1], [0], [0], [1], [0, 0, 1, 1], [], []>} : vector<8x16xbf16>, vector<16x64xbf16>, vector<8x64xf32> -> vector<8x64xf32>
    %c0_3 = arith.constant 0 : index
    %c0_4 = arith.constant 0 : index
    %3 = vector.load %arg2[%c0_3, %c0_4] : memref<8x8xf32, #tpu.memory_space<vmem>>, vector<8x8xf32>
    %cst_5 = arith.constant dense<0.000000e+00> : vector<8x64xf32>
    %4 = tpu.matmul %3, %2, %cst_5 {dimension_numbers = #tpu.dot_dimension_numbers<[1], [0], [0], [1], [0, 0, 1, 1], [], []>} : vector<8x8xf32>, vector<8x64xf32>, vector<8x64xf32> -> vector<8x64xf32>
    %c0_6 = arith.constant 0 : index
    %c0_7 = arith.constant 0 : index
    %5 = vector.load %arg4[%c0_6, %c0_7] : memref<8x64xf32, #tpu.memory_space<vmem>>, vector<8x64xf32>
    %6 = arith.addf %4, %5 : vector<8x64xf32>
    %cst_8 = arith.constant dense<0.000000e+00> : vector<8xf32>
    %7 = vector.multi_reduction <add>, %6, %cst_8 [1] : vector<8x64xf32> to vector<8xf32>
    %8 = vector.shape_cast %7 : vector<8xf32> to vector<8x1xf32>
    %cst_9 = arith.constant 6.400000e+01 : f32
    %9 = vector.broadcast %cst_9 : f32 to vector<8x1xf32>
    %10 = arith.divf %8, %9 : vector<8x1xf32>
    %11 = vector.broadcast %10 : vector<8x1xf32> to vector<8x64xf32>
    %12 = arith.subf %6, %11 : vector<8x64xf32>
    %13 = arith.mulf %12, %12 : vector<8x64xf32>
    %cst_10 = arith.constant dense<0.000000e+00> : vector<8xf32>
    %14 = vector.multi_reduction <add>, %13, %cst_10 [1] : vector<8x64xf32> to vector<8xf32>
    %15 = vector.shape_cast %14 : vector<8xf32> to vector<8x1xf32>
    %cst_11 = arith.constant 6.400000e+01 : f32
    %16 = vector.broadcast %cst_11 : f32 to vector<8x1xf32>
    %17 = arith.divf %15, %16 : vector<8x1xf32>
    %18 = vector.broadcast %10 : vector<8x1xf32> to vector<8x64xf32>
    %19 = arith.subf %6, %18 : vector<8x64xf32>
    %cst_12 = arith.constant 9.99999974E-6 : f32
    %20 = vector.broadcast %cst_12 : f32 to vector<8x1xf32>
    %21 = arith.addf %17, %20 : vector<8x1xf32>
    %22 = math.rsqrt %21 : vector<8x1xf32>
    %23 = vector.broadcast %22 : vector<8x1xf32> to vector<8x64xf32>
    %24 = arith.mulf %19, %23 : vector<8x64xf32>
    %c0_13 = arith.constant 0 : index
    %c0_14 = arith.constant 0 : index
    %25 = vector.load %arg5[%c0_13, %c0_14] : memref<1x64xf32, #tpu.memory_space<vmem>>, vector<1x64xf32>
    %26 = vector.broadcast %25 : vector<1x64xf32> to vector<8x64xf32>
    %27 = arith.mulf %24, %26 : vector<8x64xf32>
    %c0_15 = arith.constant 0 : index
    %c0_16 = arith.constant 0 : index
    %28 = vector.load %arg6[%c0_15, %c0_16] : memref<1x64xf32, #tpu.memory_space<vmem>>, vector<1x64xf32>
    %29 = vector.broadcast %28 : vector<1x64xf32> to vector<8x64xf32>
    %30 = arith.addf %27, %29 : vector<8x64xf32>
    %c0_17 = arith.constant 0 : index
    %c0_18 = arith.constant 0 : index
    %31 = vector.load %arg8[%c0_17, %c0_18] : memref<1x64xf32, #tpu.memory_space<vmem>>, vector<1x64xf32>
    %32 = vector.broadcast %31 : vector<1x64xf32> to vector<8x64xf32>
    %33 = arith.mulf %30, %32 : vector<8x64xf32>
    %cst_19 = arith.constant dense<0.000000e+00> : vector<8xf32>
    %34 = vector.multi_reduction <add>, %33, %cst_19 [1] : vector<8x64xf32> to vector<8xf32>
    %35 = vector.shape_cast %34 : vector<8xf32> to vector<8x1xf32>
    %c0_20 = arith.constant 0 : index
    %c0_21 = arith.constant 0 : index
    %36 = vector.load %arg7[%c0_20, %c0_21] : memref<1x64xf32, #tpu.memory_space<vmem>>, vector<1x64xf32>
    %37 = vector.broadcast %36 : vector<1x64xf32> to vector<8x64xf32>
    %38 = arith.mulf %30, %37 : vector<8x64xf32>
    %cst_22 = arith.constant dense<0.000000e+00> : vector<8xf32>
    %39 = vector.multi_reduction <add>, %38, %cst_22 [1] : vector<8x64xf32> to vector<8xf32>
    %40 = vector.shape_cast %39 : vector<8xf32> to vector<8x1xf32>
    %41 = vector.shape_cast %35 : vector<8x1xf32> to vector<1x8x1xf32>
    %42 = vector.shape_cast %40 : vector<8x1xf32> to vector<1x8x1xf32>
    %43 = vector.extract_strided_slice %42 {offsets = [0, 0, 0], sizes = [1, 1, 1], strides = [1, 1, 1]} : vector<1x8x1xf32> to vector<1x1x1xf32>
    %44 = vector.broadcast %43 : vector<1x1x1xf32> to vector<1x8x1xf32>
    %45 = arith.addf %41, %44 : vector<1x8x1xf32>
    %c0_23 = arith.constant 0 : index
    %46 = memref.load %arg9[%c0_23] : memref<1xf32, #tpu.memory_space<smem>>
    %47 = vector.broadcast %46 : f32 to vector<1x8x1xf32>
    %48 = arith.addf %45, %47 : vector<1x8x1xf32>
    %49 = tpu.iota {dimensions = array<i32: 1>} : vector<1x8x1xi32>
    %c0_i32 = arith.constant 0 : i32
    %50 = vector.broadcast %c0_i32 : i32 to vector<1x8x1xi32>
    %51 = arith.cmpi eq, %49, %50 : vector<1x8x1xi32>
    %cst_24 = arith.constant 0xFF800000 : f32
    %52 = vector.broadcast %cst_24 : f32 to vector<1x8x1xf32>
    %53 = arith.select %51, %52, %48 : vector<1x8x1xi1>, vector<1x8x1xf32>
    %cst_25 = arith.constant dense<0xFF800000> : vector<1x1xf32>
    %54 = vector.multi_reduction <maximumf>, %53, %cst_25 [1] : vector<1x8x1xf32> to vector<1x1xf32>
    %55 = vector.shape_cast %54 : vector<1x1xf32> to vector<1x1x1xf32>
    %56 = vector.broadcast %55 : vector<1x1x1xf32> to vector<1x8x1xf32>
    %57 = arith.subf %53, %56 : vector<1x8x1xf32>
    %58 = math.exp %57 : vector<1x8x1xf32>
    %cst_26 = arith.constant dense<0.000000e+00> : vector<1x1xf32>
    %59 = vector.multi_reduction <add>, %58, %cst_26 [1] : vector<1x8x1xf32> to vector<1x1xf32>
    %60 = vector.shape_cast %59 : vector<1x1xf32> to vector<1x1x1xf32>
    %61 = vector.broadcast %60 : vector<1x1x1xf32> to vector<1x8x1xf32>
    %62 = arith.divf %58, %61 : vector<1x8x1xf32>
    %cst_27 = arith.constant 1.000000e+00 : f32
    %63 = vector.broadcast %cst_27 : f32 to vector<1x8x1xf32>
    %64 = arith.select %51, %63, %62 : vector<1x8x1xi1>, vector<1x8x1xf32>
    %65 = vector.shape_cast %64 : vector<1x8x1xf32> to vector<8x1xf32>
    %66 = vector.broadcast %65 : vector<8x1xf32> to vector<8x64xf32>
    %67 = arith.mulf %30, %66 : vector<8x64xf32>
    %c0_28 = arith.constant 0 : index
    %c0_29 = arith.constant 0 : index
    %68 = vector.load %arg10[%c0_28, %c0_29] : memref<8x64xf32, #tpu.memory_space<vmem>>, vector<8x64xf32>
    tpu.vector_store %arg10[%c0_28, %c0_29], %67 {strides = array<i32>} : memref<8x64xf32, #tpu.memory_space<vmem>>, vector<8x64xf32>,
    return
  }
  func.func @transform_0(%arg0: i32) -> (i32, i32) {
    %c0_i32 = arith.constant 0 : i32
    %c0_i32_0 = arith.constant 0 : i32
    return %arg0, %c0_i32 : i32, i32
  }
  func.func @transform_1(%arg0: i32) -> (i32, i32) {
    %c0_i32 = arith.constant 0 : i32
    %c0_i32_0 = arith.constant 0 : i32
    %c0_i32_1 = arith.constant 0 : i32
    return %c0_i32, %c0_i32_0 : i32, i32
  }
  func.func @transform_2(%arg0: i32) -> (i32, i32) {
    %c0_i32 = arith.constant 0 : i32
    %c0_i32_0 = arith.constant 0 : i32
    %c0_i32_1 = arith.constant 0 : i32
    return %c0_i32, %c0_i32_0 : i32, i32
  }
  func.func @transform_3(%arg0: i32) -> (i32, i32) {
    %c0_i32 = arith.constant 0 : i32
    %c0_i32_0 = arith.constant 0 : i32
    %c0_i32_1 = arith.constant 0 : i32
    return %c0_i32, %c0_i32_0 : i32, i32
  }
  func.func @transform_4(%arg0: i32) -> (i32, i32) {
    %c0_i32 = arith.constant 0 : i32
    %c0_i32_0 = arith.constant 0 : i32
    %c0_i32_1 = arith.constant 0 : i32
    return %c0_i32, %c0_i32_0 : i32, i32
  }
  func.func @transform_5(%arg0: i32) -> (i32, i32) {
    %c0_i32 = arith.constant 0 : i32
    %c0_i32_0 = arith.constant 0 : i32
    %c0_i32_1 = arith.constant 0 : i32
    return %c0_i32, %c0_i32_0 : i32, i32
  }
  func.func @transform_6(%arg0: i32) -> (i32, i32) {
    %c0_i32 = arith.constant 0 : i32
    %c0_i32_0 = arith.constant 0 : i32
    %c0_i32_1 = arith.constant 0 : i32
    return %c0_i32, %c0_i32_0 : i32, i32
  }
  func.func @transform_7(%arg0: i32) -> (i32, i32) {
    %c0_i32 = arith.constant 0 : i32
    %c0_i32_0 = arith.constant 0 : i32
    %c0_i32_1 = arith.constant 0 : i32
    return %c0_i32, %c0_i32_0 : i32, i32
  }
  func.func @transform_8(%arg0: i32) -> i32 {
    %c0_i32 = arith.constant 0 : i32
    %c0_i32_0 = arith.constant 0 : i32
    return %c0_i32 : i32
  }
  func.func @transform_9(%arg0: i32) -> (i32, i32) {
    %c0_i32 = arith.constant 0 : i32
    %c0_i32_0 = arith.constant 0 : i32
    return %arg0, %c0_i32 : i32, i32
  }
}

</mosaic_0001>

<bundles_post_ra>
// kernel: lgcn_forward.1
= control target key start
LH: loop header
LB: loop body
LE: loop exit
PB: predicated region body
PF: predicated region fallthrough
CT: control target
= control target key end

     0   :  { %s708_s11 = smov 0   ;;  %s757_s0 = inlined_call_operand.vmem [shape: bf16[16,16], index: 0, kind: input, shape index: {}]   ;;  %s758_s1 = inlined_call_operand.vmem [shape: f32[8,8], index: 1, kind: input, shape index: {}]   ;;  %s759_s2 = inlined_call_operand.vmem [shape: bf16[16,64], index: 2, kind: input, shape index: {}]   ;;  %s760_s3 = inlined_call_operand.vmem [shape: f32[8,64], index: 3, kind: input, shape index: {}]   ;;  %s761_s4 = inlined_call_operand.vmem [shape: f32[1,64], index: 4, kind: input, shape index: {}]   ;;  %s762_s5 = inlined_call_operand.vmem [shape: f32[1,64], index: 5, kind: input, shape index: {}]   ;;  %s763_s6 = inlined_call_operand.vmem [shape: f32[1,64], index: 6, kind: input, shape index: {}]   ;;  %s764_s7 = inlined_call_operand.vmem [shape: f32[1,64], index: 7, kind: input, shape index: {}]   ;;  %s765_s8 = inlined_call_operand.<no memory space> [shape: f32[1], index: 8, kind: input, shape index: {}]   ;;  %s766_s9 = inlined_call_operand.vmem [shape: f32[16,64], index: 9, kind: output, shape index: {}]  }
   0x1   :  { %14 = sst [smem:[#allocation2]] %s765_s8 }
   0x2 LB: > { %s597_s12 = sadd.s32 4294967295, %s651_s11   ;;  %p601_p0 = scmp.ge.s32.totalorder %s651_s11, 1  ;;  %s651_s11 = sphi %s708_s11, %s20_s11  }
   0x3   : > { %p287_p1 = scmp.lt.s32.totalorder %s651_s11, 3 }
   0x5   : > { %p288_p2 = pnand %p601_p0, %p287_p1 }
   0x6   : > { %p321_p3 = scmp.lt.s32.totalorder (!%p288_p2), %s597_s12, 1  ;;  %s517_s30 = sld [smem:[#allocation2]] (!%p288_p2) }
   0x7   : > { %291 = sbr.rel (%p288_p2) target bundleno = 926 (0x39e), region = 56 }
   0xc   : > { %v638_v0 = vld [vmem:[%s759_s2] sm:$0xff]   ;;  %v653_v1 = vmov 0.0   ;;  %vm654_vm0 = vmmov 0   ;;  %s768_s12 = smov (!%p321_p3, %s597_s12), 1  ;;  %vm339_vm1 = vcmask 130048   ;;  %vm385_vm2 = vcmask 64512  }
   0xd   : > { %617 = vmatprep.subr.bf16.mxu0 %v653_v1  ;;  %623 = vmatprep.subr.mxu1 %v653_v1  ;;  %s602_s8 = sshll.u32 %s768_s12, 2  ;;  %v383_v3 = vld [vmem:[%s758_s1] sm:$0xff]  ;;  %vm459_vm3 = vcmask 523264   ;;  %v512_v33 = vlaneseq  ;;  %v518_v38 = vstv %s517_s30  ;;  %s603_s10 = sshll.u32 %s768_s12, 3 }
   0xe   : > { %618 = vmatpush3.bf16.msra.mxu0 %v638_v0  ;;  %619 = vmatprep.mubr.msk.bf16.mxu0 %vm654_vm0, %v653_v1  ;;  %s324_s17 = scalar_lea.vmem %s757_s0, %s602_s8  ;;  %v384_v8 = vld [vmem:[%s760_s3] sm:$0xff]  ;;  %s328_s8 = scalar_lea.vmem %s766_s9, %s603_s10 }
   0xf   : > { %625 = vmatprep.mubr.msk.f32.mxu1 %vm654_vm0, %v653_v1  ;;  %v330_v2 = vld [vmem:[%s324_s17] sm:$0xf]  ;;  %v513_v34 = vshrl.u32 %v512_v33, 7 }
  0x10   : > { %v607_v22 = vld [vmem:[%s761_s4] ss:$0 sm:$0xff] }
  0x11   : > { %620 = vmatmul.mubr.msk.bf16.vlgmr.msra.gmra.mxu0 %vm339_vm1, %v330_v2  ;;  %v608_v24 = vld [vmem:[%s762_s5] ss:$0 sm:$0xff]  ;;  %v514_v35 = vsub.s32 0, %v513_v34  ;;  %vm522_vm4 = vcmp.eq.s32.totalorder %v513_v34, 0 }
  0x12   : > { %v610_v26 = vld [vmem:[%s763_s6] ss:$0 sm:$0xff] }
  0x13   : > { %v609_v28 = vld [vmem:[%s764_s7] ss:$0 sm:$0xff] }
  0xd1   : > { %v377_v4 = vpop.f32.mrf.mxu0 }
  0xd2   : > { %624 = vmatpush3.msra.mxu1 %v377_v4 }
  0xd3   : > { %v621_v5 = vpop.f32.mrf.mxu0  ;;  %626 = vmatmul.mubr.msk.f32.vlgmr.msra.gmra.mxu1 %vm385_vm2, %v383_v3 }
  0xd5   : > { %v380_v6 = vpop.f32.mrf.mxu0 }
  0xd7   : > { %v622_v7 = vpop.f32.mrf.mxu0 }
 0x193   : > { %v455_v9 = vpop.f32.mrf.mxu1 }
 0x194   : > { %v456_v10 = vadd.f32 %v455_v9, %v384_v8 }
 0x195   : > { %v627_v11 = vpop.f32.mrf.mxu1 }
 0x196   : > { %v460_v12 = vsel %vm459_vm3, %v456_v10, 0.0 }
 0x197   : > { %461 = vadd.xlane.f32.xlu0 %v460_v12 }
 0x220   : > { %v462_v13 = vpop.xlane.xlu0 %461 }
 0x221   : > { %v464_v14 = vmul.f32 0.015625, %v462_v13 }
 0x223   : > { %v465_v15 = vsub.f32 %v456_v10, %v464_v14 }
 0x225   : > { %v466_v16 = vmul.f32 %v465_v15, %v465_v15 }
 0x227   : > { %v467_v17 = vsel %vm459_vm3, %v466_v16, 0.0 }
 0x228   : > { %468 = vadd.xlane.f32.xlu0 %v467_v17 }
 0x2b1   : > { %v469_v18 = vpop.xlane.xlu0 %468 }
 0x2b2   : > { %v470_v19 = vmul.f32 0.015625, %v469_v18 }
 0x2b4   : > { %v471_v20 = vadd.f32 1e-05, %v470_v19 }
 0x2b6   : > { %639 = vrsqrt.f32 %v471_v20 }
 0x2c3   : > { %v640_v21 = vpop.eup %639 }
 0x2c4   : > { %v473_v23 = vmul.f32 %v640_v21, %v465_v15 }
 0x2c6   : > { %v481_v25 = vmul.f32 %v607_v22, %v473_v23 }
 0x2c8   : > { %v489_v27 = vadd.f32 %v608_v24, %v481_v25 }
 0x2ca   : > { %v508_v29 = vmul.f32 %v610_v26, %v489_v27  ;;  %v497_v31 = vmul.f32 %v609_v28, %v489_v27 }
 0x2cc   : > { %v509_v30 = vsel %vm459_vm3, %v508_v29, 0.0  ;;  %v498_v32 = vsel %vm459_vm3, %v497_v31, 0.0 }
 0x2cd   : > { %510 = vadd.xlane.f32.xlu1 %v509_v30 }
 0x2d1   : > { %499 = vadd.xlane.f32.xlu1 %v498_v32 }
 0x356   : > { %v511_v36 = vpop.xlane.xlu1 %510 }
 0x357   : > { %v515_v37 = vrot.slane %v511_v36, %v514_v35 }
 0x35a   : > { %v500_v39 = vpop.xlane.xlu1 %499 }
 0x35b   : > { %v516_v40 = vadd.f32 %v515_v37, %v500_v39 }
 0x35d   : > { %v519_v41 = vadd.f32 %v518_v38, %v516_v40 }
 0x35f   : > { %v523_v42 = vsel %vm522_vm4, -inf, %v519_v41 }
 0x360   : > { %v524_v43 = vrot.slane %v523_v42, 4 }
 0x362   : > { %v525_v44 = vmax.f32 %v523_v42, %v524_v43 }
 0x364   : > { %v526_v45 = vrot.slane %v525_v44, 2 }
 0x366   : > { %v527_v46 = vmax.f32 %v525_v44, %v526_v45 }
 0x368   : > { %v528_v47 = vrot.slane %v527_v46, 1 }
 0x36a   : > { %v529_v48 = vmax.f32 %v527_v46, %v528_v47 }
 0x36c   : > { %v530_v49 = vsub.f32 %v523_v42, %v529_v48 }
 0x36e   : > { %v531_v50 = vmul.f32 1.442695, %v530_v49 }
 0x370   : > { %641 = vpow2.f32 %v531_v50 }
 0x37d   : > { %v642_v51 = vpop.eup %641 }
 0x37e   : > { %v533_v52 = vrot.slane %v642_v51, 4 }
 0x380   : > { %v534_v53 = vadd.f32 %v642_v51, %v533_v52 }
 0x382   : > { %v535_v54 = vrot.slane %v534_v53, 2 }
 0x384   : > { %v536_v55 = vadd.f32 %v535_v54, %v534_v53 }
 0x386   : > { %v537_v56 = vrot.slane %v536_v55, 1 }
 0x388   : > { %v538_v57 = vadd.f32 %v537_v56, %v536_v55 }
 0x38a   : > { %643 = vrcp.f32 %v538_v57 }
 0x397   : > { %v644_v58 = vpop.eup %643 }
 0x398   : > { %v540_v59 = vmul.f32 %v644_v58, %v642_v51 }
 0x39a   : > { %v541_v60 = vsel %vm522_vm4, 1.0, %v540_v59 }
 0x39b   : > { %v542_v61 = vmul.f32 %v541_v60, %v489_v27 }
 0x39d   : > { %543 = vst.msk [vmem:[%s328_s8] sm:$0xff] %vm459_vm3, %v542_v61 }
 0x39e PF: > { %s20_s11 = sadd.s32 1, %s651_s11  }
 0x39f   : > { %p17_p4 = scmp.ge.s32.totalorder %s20_s11, 4  }
 0x3a1   :  { %19 = sbr.rel (!%p17_p4) target bundleno = 2 (0x2), region = 86 }

</bundles_post_ra>
